<compile_context>
chip_gen: v7x
topology: tpu7x:2x2x1
jax: 0.10.0
libtpu: 0.0.40
codegen_flags: <defaults>
</compile_context>

<pallas_src>
import functools

import jax
import jax.numpy as jnp
from jax import lax
from jax.experimental import pallas as pl
from jax.experimental.pallas import tpu as pltpu


# ----------------------------------------------------------------------------
# small helpers
# ----------------------------------------------------------------------------
def _round_up(x, m):
    return ((x + m - 1) // m) * m


def _pad_rows(x, m_pad):
    m = x.shape[0]
    if m == m_pad:
        return x
    return jnp.pad(x, ((0, m_pad - m), (0, 0)))


def _gelu(x):
    # GPT-2 "gelu_new" (tanh approximation); same formula used in kernel & ref.
    return 0.5 * x * (1.0 + jnp.tanh(0.7978845608028654 * (x + 0.044715 * x * x * x)))


def _layernorm_f32(x, g, b, eps):
    mu = jnp.mean(x, axis=-1, keepdims=True)
    xc = x - mu
    var = jnp.mean(xc * xc, axis=-1, keepdims=True)
    return xc * lax.rsqrt(var + eps) * g + b


# ----------------------------------------------------------------------------
# Pallas kernels
# ----------------------------------------------------------------------------
def _embed_kernel(ids_ref, wte_ref, pos_ref, o_ref):
    """Token-embedding gather as a one-hot MXU matmul + positional add."""
    # TODO(synk): at the real 50257-token vocab the wte row gather would use a
    # scalar-prefetch DMA gather instead of a VMEM-resident one-hot matmul.
    ids = ids_ref[...]                                     # (tm, 1) int32
    v = wte_ref.shape[0]
    onehot = (lax.broadcasted_iota(jnp.int32, (ids.shape[0], v), 1) == ids)
    onehot = onehot.astype(jnp.float32)
    tok = jnp.dot(onehot, wte_ref[...], preferred_element_type=jnp.float32)
    o_ref[...] = (tok + pos_ref[...]).astype(o_ref.dtype)


def _ln_qkv_kernel(x_ref, g_ref, b_ref, w_ref, bias_ref, o_ref, *, eps):
    """Fused LayerNorm1 + QKV projection (weight block VMEM-resident)."""
    a = _layernorm_f32(x_ref[...].astype(jnp.float32), g_ref[...], b_ref[...], eps)
    y = jnp.dot(a, w_ref[...], preferred_element_type=jnp.float32) + bias_ref[...]
    o_ref[...] = y.astype(o_ref.dtype)


def _attn_kernel(q_ref, k_ref, v_ref, o_ref, *, scale):
    """Causal multi-head attention for one batch element (all heads batched)."""
    q = q_ref[0].astype(jnp.float32)                       # (nH, T, hd)
    k = k_ref[0].astype(jnp.float32)
    v = v_ref[0].astype(jnp.float32)
    s = jnp.einsum("htd,hsd->hts", q, k,
                   preferred_element_type=jnp.float32) * scale      # (nH, T, T)
    row = lax.broadcasted_iota(jnp.int32, s.shape, 1)       # query index
    col = lax.broadcasted_iota(jnp.int32, s.shape, 2)       # key index
    s = jnp.where(col <= row, s, -1e30)
    m = jnp.max(s, axis=-1, keepdims=True)
    p = jnp.exp(s - m)
    p = p * pl.reciprocal(jnp.sum(p, axis=-1, keepdims=True), approx=True)
    o = jnp.einsum("hts,hsd->htd", p, v, preferred_element_type=jnp.float32)
    o_ref[0] = o.astype(o_ref.dtype)


def _outproj_mlp_kernel(ctx_ref, x_ref, wo_ref, bo_ref, g2_ref, b2_ref,
                        wfc_ref, bfc_ref, wproj_ref, bproj_ref, o_ref, *, eps):
    """Fused attn-out-proj + residual + LayerNorm2 + FC + GELU + proj + residual.

    The (tm, 4H) MLP intermediate and the post-attention residual stay in
    vregs/VMEM; only the final block output is written to HBM."""
    x = x_ref[...].astype(jnp.float32)                     # (tm, D) residual in
    ctx = ctx_ref[...].astype(jnp.float32)                 # (tm, D) attn context
    x = x + jnp.dot(ctx, wo_ref[...], preferred_element_type=jnp.float32) + bo_ref[...]
    a2 = _layernorm_f32(x, g2_ref[...], b2_ref[...], eps)
    h = _gelu(jnp.dot(a2, wfc_ref[...], preferred_element_type=jnp.float32) + bfc_ref[...])
    y = x + jnp.dot(h, wproj_ref[...], preferred_element_type=jnp.float32) + bproj_ref[...]
    o_ref[...] = y.astype(o_ref.dtype)


def _layernorm_kernel(x_ref, g_ref, b_ref, o_ref, *, eps):
    o_ref[...] = _layernorm_f32(x_ref[...].astype(jnp.float32),
                                g_ref[...], b_ref[...], eps).astype(o_ref.dtype)


# ----------------------------------------------------------------------------
# pallas_call wrappers
# ----------------------------------------------------------------------------
_ROW_BLOCK = 256  # rows per grid step at large M; toy shapes fit in one block.


def _row_tiling(m):
    tm = min(_ROW_BLOCK, _round_up(m, 8))
    m_pad = _round_up(m, tm)
    return tm, m_pad


def embed_pallas(input_ids, wte, wpe):
    b, t = input_ids.shape
    v, d = wte.shape
    m = b * t
    tm, m_pad = _row_tiling(m)
    ids2 = _pad_rows(input_ids.reshape(m, 1).astype(jnp.int32), m_pad)
    pos = _pad_rows(jnp.tile(wpe[:t], (b, 1)), m_pad)       # (m_pad, d)
    out = pl.pallas_call(
        _embed_kernel,
        out_shape=jax.ShapeDtypeStruct((m_pad, d), jnp.float32),
        grid_spec=pltpu.PrefetchScalarGridSpec(
            num_scalar_prefetch=0,
            grid=(m_pad // tm,),
            in_specs=[
                pl.BlockSpec((tm, 1), lambda i: (i, 0)),     # ids rows
                pl.BlockSpec((v, d), lambda i: (0, 0)),      # wte (resident)
                pl.BlockSpec((tm, d), lambda i: (i, 0)),     # positional rows
            ],
            out_specs=pl.BlockSpec((tm, d), lambda i: (i, 0)),
        ),
        compiler_params=pltpu.CompilerParams(dimension_semantics=("parallel",)),
    )(ids2, wte, pos)
    return out[:m]


def ln_qkv_pallas(x, gamma, beta, w, bias, *, eps=1e-5):
    m, d = x.shape
    n = w.shape[1]
    tm, m_pad = _row_tiling(m)
    out = pl.pallas_call(
        functools.partial(_ln_qkv_kernel, eps=eps),
        out_shape=jax.ShapeDtypeStruct((m_pad, n), x.dtype),
        grid_spec=pltpu.PrefetchScalarGridSpec(
            num_scalar_prefetch=0,
            grid=(m_pad // tm,),
            in_specs=[
                pl.BlockSpec((tm, d), lambda i: (i, 0)),      # activation rows
                pl.BlockSpec((1, d), lambda i: (0, 0)),       # ln1 gamma
                pl.BlockSpec((1, d), lambda i: (0, 0)),       # ln1 beta
                pl.BlockSpec((d, n), lambda i: (0, 0)),       # w_qkv (resident)
                pl.BlockSpec((1, n), lambda i: (0, 0)),       # b_qkv (resident)
            ],
            out_specs=pl.BlockSpec((tm, n), lambda i: (i, 0)),
        ),
        compiler_params=pltpu.CompilerParams(dimension_semantics=("parallel",)),
    )(_pad_rows(x, m_pad), gamma.reshape(1, d), beta.reshape(1, d),
      w, bias.reshape(1, n))
    return out[:m]


def causal_attention_pallas(q, k, v):
    # q, k, v: (B, nH, T, hd)
    b, nh, t, hd = q.shape
    scale = float(hd) ** -0.5
    spec = pl.BlockSpec((1, nh, t, hd), lambda i: (i, 0, 0, 0))
    return pl.pallas_call(
        functools.partial(_attn_kernel, scale=scale),
        out_shape=jax.ShapeDtypeStruct((b, nh, t, hd), q.dtype),
        grid_spec=pltpu.PrefetchScalarGridSpec(
            num_scalar_prefetch=0,
            grid=(b,),                       # independent batch elements
            in_specs=[spec, spec, spec],
            out_specs=spec,
        ),
        compiler_params=pltpu.CompilerParams(dimension_semantics=("parallel",)),
    )(q, k, v)


def outproj_mlp_pallas(ctx, x, wo, bo, g2, b2, wfc, bfc, wproj, bproj, *, eps=1e-5):
    m, d = x.shape
    dff = wfc.shape[1]
    tm, m_pad = _row_tiling(m)
    out = pl.pallas_call(
        functools.partial(_outproj_mlp_kernel, eps=eps),
        out_shape=jax.ShapeDtypeStruct((m_pad, d), x.dtype),
        grid_spec=pltpu.PrefetchScalarGridSpec(
            num_scalar_prefetch=0,
            grid=(m_pad // tm,),
            in_specs=[
                pl.BlockSpec((tm, d), lambda i: (i, 0)),      # attention ctx rows
                pl.BlockSpec((tm, d), lambda i: (i, 0)),      # residual rows
                pl.BlockSpec((d, d), lambda i: (0, 0)),       # w_o    (resident)
                pl.BlockSpec((1, d), lambda i: (0, 0)),       # b_o
                pl.BlockSpec((1, d), lambda i: (0, 0)),       # ln2 gamma
                pl.BlockSpec((1, d), lambda i: (0, 0)),       # ln2 beta
                pl.BlockSpec((d, dff), lambda i: (0, 0)),     # w_fc   (resident)
                pl.BlockSpec((1, dff), lambda i: (0, 0)),     # b_fc
                pl.BlockSpec((dff, d), lambda i: (0, 0)),     # w_proj (resident)
                pl.BlockSpec((1, d), lambda i: (0, 0)),       # b_proj
            ],
            out_specs=pl.BlockSpec((tm, d), lambda i: (i, 0)),
        ),
        compiler_params=pltpu.CompilerParams(dimension_semantics=("parallel",)),
    )(_pad_rows(ctx, m_pad), _pad_rows(x, m_pad), wo, bo.reshape(1, d),
      g2.reshape(1, d), b2.reshape(1, d), wfc, bfc.reshape(1, dff),
      wproj, bproj.reshape(1, d))
    return out[:m]


def layernorm_pallas(x, gamma, beta, *, eps=1e-5):
    m, d = x.shape
    tm, m_pad = _row_tiling(m)
    out = pl.pallas_call(
        functools.partial(_layernorm_kernel, eps=eps),
        out_shape=jax.ShapeDtypeStruct((m_pad, d), x.dtype),
        grid_spec=pltpu.PrefetchScalarGridSpec(
            num_scalar_prefetch=0,
            grid=(m_pad // tm,),
            in_specs=[
                pl.BlockSpec((tm, d), lambda i: (i, 0)),
                pl.BlockSpec((1, d), lambda i: (0, 0)),
                pl.BlockSpec((1, d), lambda i: (0, 0)),
            ],
            out_specs=pl.BlockSpec((tm, d), lambda i: (i, 0)),
        ),
        compiler_params=pltpu.CompilerParams(dimension_semantics=("parallel",)),
    )(_pad_rows(x, m_pad), gamma.reshape(1, d), beta.reshape(1, d))
    return out[:m]


# ----------------------------------------------------------------------------
# GPT-2 forward (Pallas) and pure-JAX reference
# ----------------------------------------------------------------------------
def gpt2_forward_pallas(params, input_ids, n_head, *, eps=1e-5):
    b, t = input_ids.shape
    d = params["wte"].shape[1]
    hd = d // n_head

    def to_heads(z):
        return z.reshape(b, t, n_head, hd).transpose(0, 2, 1, 3)

    x = embed_pallas(input_ids, params["wte"], params["wpe"])          # (B*T, D)
    for blk in params["blocks"]:
        # (1) fused LN1 + QKV projection
        qkv = ln_qkv_pallas(x, blk["ln1_g"], blk["ln1_b"],
                            blk["w_qkv"], blk["b_qkv"], eps=eps)       # (B*T, 3D)
        q, k, v = jnp.split(qkv, 3, axis=-1)
        # (2) causal multi-head attention (per batch element)
        ctx = causal_attention_pallas(to_heads(q), to_heads(k), to_heads(v))
        ctx = ctx.transpose(0, 2, 1, 3).reshape(b * t, d)
        # (3) fused out-proj + residual + LN2 + FC + GELU + proj + residual
        x = outproj_mlp_pallas(ctx, x, blk["w_o"], blk["b_o"],
                               blk["ln2_g"], blk["ln2_b"],
                               blk["w_fc"], blk["b_fc"],
                               blk["w_proj"], blk["b_proj"], eps=eps)
    x = layernorm_pallas(x, params["lnf_g"], params["lnf_b"], eps=eps)
    return x.reshape(b, t, d)


def gpt2_forward_ref(params, input_ids, n_head, *, eps=1e-5):
    b, t = input_ids.shape
    d = params["wte"].shape[1]
    hd = d // n_head
    hp = lax.Precision.HIGHEST

    def ln(x, g, bta):
        mu = jnp.mean(x, axis=-1, keepdims=True)
        var = jnp.mean((x - mu) ** 2, axis=-1, keepdims=True)
        return (x - mu) * lax.rsqrt(var + eps) * g + bta

    def heads(z):
        return z.reshape(b, t, n_head, hd).transpose(0, 2, 1, 3)

    x = jnp.take(params["wte"], input_ids, axis=0) + params["wpe"][:t][None]
    x = x.reshape(b * t, d)
    mask = jnp.tril(jnp.ones((t, t), bool))
    for blk in params["blocks"]:
        a = ln(x, blk["ln1_g"], blk["ln1_b"])
        qkv = jnp.dot(a, blk["w_qkv"], precision=hp) + blk["b_qkv"]
        q, k, v = (heads(z) for z in jnp.split(qkv, 3, axis=-1))
        s = jnp.einsum("bhtd,bhsd->bhts", q, k, precision=hp) / jnp.sqrt(float(hd))
        s = jnp.where(mask[None, None], s, -1e30)
        p = jax.nn.softmax(s, axis=-1)
        ctx = jnp.einsum("bhts,bhsd->bhtd", p, v, precision=hp)
        ctx = ctx.transpose(0, 2, 1, 3).reshape(b * t, d)
        x = x + jnp.dot(ctx, blk["w_o"], precision=hp) + blk["b_o"]
        a2 = ln(x, blk["ln2_g"], blk["ln2_b"])
        h = _gelu(jnp.dot(a2, blk["w_fc"], precision=hp) + blk["b_fc"])
        x = x + jnp.dot(h, blk["w_proj"], precision=hp) + blk["b_proj"]
    x = ln(x, params["lnf_g"], params["lnf_b"])
    return x.reshape(b, t, d)


# ----------------------------------------------------------------------------
# module wrapper with synthetic parameters
# ----------------------------------------------------------------------------
def _init_params(key, *, vocab, n_pos, d, n_layer):
    keys = iter(jax.random.split(key, 2 + 8 * n_layer))

    def nrm(shape, std=0.02):
        return std * jax.random.normal(next(keys), shape, jnp.float32)

    params = {
        "wte": nrm((vocab, d)),
        "wpe": nrm((n_pos, d)),
        "lnf_g": jnp.ones((d,), jnp.float32),
        "lnf_b": jnp.zeros((d,), jnp.float32),
        "blocks": [],
    }
    for _ in range(n_layer):
        params["blocks"].append({
            "ln1_g": jnp.ones((d,), jnp.float32), "ln1_b": jnp.zeros((d,), jnp.float32),
            "w_qkv": nrm((d, 3 * d)), "b_qkv": nrm((3 * d,)),
            "w_o": nrm((d, d)), "b_o": nrm((d,)),
            "ln2_g": jnp.ones((d,), jnp.float32), "ln2_b": jnp.zeros((d,), jnp.float32),
            "w_fc": nrm((d, 4 * d)), "b_fc": nrm((4 * d,)),
            "w_proj": nrm((4 * d, d)), "b_proj": nrm((d,)),
        })
    return params


class AnsEmbeddingPallas:
    """AnsEmbedding.forward == tokenizer -> GPT2Model -> (input_ids, last_hidden_state).

    The tokenizer and pretrained checkpoint have no Pallas equivalent; the GPT-2
    transformer stack is implemented with Pallas kernels on synthetic params."""

    def __init__(self, vocab_size=128, n_embd=64, n_head=4, n_layer=2,
                 n_positions=32, key=jax.random.PRNGKey(0)):
        self.n_head = n_head
        self.params = _init_params(key, vocab=vocab_size, n_pos=n_positions,
                                   d=n_embd, n_layer=n_layer)

    def __call__(self, input_ids):
        # TODO(synk): the HF GPT-2 tokenizer (string processing) cannot be a
        # Pallas kernel; input_ids are taken directly as its stand-in.
        hidden_states = gpt2_forward_pallas(self.params, input_ids, self.n_head)
        return input_ids, hidden_states


# ----------------------------------------------------------------------------
# main
# ----------------------------------------------------------------------------
if __name__ == "__main__":
    # Small shapes consistent with the module: max_length=17 from the tokenizer
    # call; scaled-down GPT-2 (real: vocab 50257, D=768, 12 heads, 12 layers).
    B, T = 2, 17
    VOCAB, D, N_HEAD, N_LAYER, N_POS = 128, 64, 4, 2, 32

    root = jax.random.PRNGKey(0)
    k_ids, k_par = jax.random.split(root)
    input_ids = jax.random.randint(k_ids, (B, T), 0, VOCAB, dtype=jnp.int32)

    model = AnsEmbeddingPallas(vocab_size=VOCAB, n_embd=D, n_head=N_HEAD,
                               n_layer=N_LAYER, n_positions=N_POS, key=k_par)

    ids_out, hidden = model(input_ids)
    hidden = jax.block_until_ready(hidden)

    ref = jax.block_until_ready(gpt2_forward_ref(model.params, input_ids, N_HEAD))

    assert ids_out.shape == (B, T), ids_out.shape
    assert hidden.shape == (B, T, D), hidden.shape
    max_err = float(jnp.max(jnp.abs(hidden - ref)))
    assert jnp.allclose(hidden, ref, atol=5e-3, rtol=5e-3), max_err

    print("KERNEL_OK")
</pallas_src>

<mosaic_0001>
module attributes {stable_mosaic.version = 11 : i64} {
  func.func @_embed_kernel(%arg0: i32, %arg1: memref<40x1xi32, #tpu.memory_space<vmem>>, %arg2: memref<128x64xf32, #tpu.memory_space<vmem>>, %arg3: memref<40x64xf32, #tpu.memory_space<vmem>>, %arg4: memref<40x64xf32, #tpu.memory_space<vmem>>) attributes {dimension_semantics = [#tpu.dimension_semantics<parallel>], iteration_bounds = array<i64: 1>, scalar_prefetch = 0 : i64, scratch_operands = 0 : i64, tpu.core_type = #tpu.core_type<tc>, window_params = [{transform_indices = @transform_0, window_bounds = array<i64: 40, 1>}, {pipeline_mode = #tpu.pipeline_mode<synchronous>, transform_indices = @transform_1, window_bounds = array<i64: 128, 64>}, {transform_indices = @transform_2, window_bounds = array<i64: 40, 64>}, {transform_indices = @transform_3, window_bounds = array<i64: 40, 64>}]} {
    %c0 = arith.constant 0 : index
    %c0_0 = arith.constant 0 : index
    %0 = vector.load %arg1[%c0, %c0_0] : memref<40x1xi32, #tpu.memory_space<vmem>>, vector<40x1xi32>
    %1 = tpu.iota {dimensions = array<i32: 1>} : vector<40x128xi32>
    %2 = vector.broadcast %0 : vector<40x1xi32> to vector<40x128xi32>
    %3 = arith.cmpi eq, %1, %2 : vector<40x128xi32>
    %4 = arith.extui %3 : vector<40x128xi1> to vector<40x128xi32>
    %5 = arith.sitofp %4 : vector<40x128xi32> to vector<40x128xf32>
    %c0_1 = arith.constant 0 : index
    %c0_2 = arith.constant 0 : index
    %6 = vector.load %arg2[%c0_1, %c0_2] : memref<128x64xf32, #tpu.memory_space<vmem>>, vector<128x64xf32>
    %cst = arith.constant dense<0.000000e+00> : vector<40x64xf32>
    %7 = tpu.matmul %5, %6, %cst {dimension_numbers = #tpu.dot_dimension_numbers<[1], [0], [0], [1], [0, 0, 1, 1], [], []>} : vector<40x128xf32>, vector<128x64xf32>, vector<40x64xf32> -> vector<40x64xf32>
    %c0_3 = arith.constant 0 : index
    %c0_4 = arith.constant 0 : index
    %8 = vector.load %arg3[%c0_3, %c0_4] : memref<40x64xf32, #tpu.memory_space<vmem>>, vector<40x64xf32>
    %9 = arith.addf %7, %8 : vector<40x64xf32>
    %c0_5 = arith.constant 0 : index
    %c0_6 = arith.constant 0 : index
    %10 = vector.load %arg4[%c0_5, %c0_6] : memref<40x64xf32, #tpu.memory_space<vmem>>, vector<40x64xf32>
    tpu.vector_store %arg4[%c0_5, %c0_6], %9 {strides = array<i32>} : memref<40x64xf32, #tpu.memory_space<vmem>>, vector<40x64xf32>,
    return
  }
  func.func @transform_0(%arg0: i32) -> (i32, i32) {
    %c0_i32 = arith.constant 0 : i32
    %c0_i32_0 = arith.constant 0 : i32
    return %arg0, %c0_i32 : i32, i32
  }
  func.func @transform_1(%arg0: i32) -> (i32, i32) {
    %c0_i32 = arith.constant 0 : i32
    %c0_i32_0 = arith.constant 0 : i32
    %c0_i32_1 = arith.constant 0 : i32
    return %c0_i32, %c0_i32_0 : i32, i32
  }
  func.func @transform_2(%arg0: i32) -> (i32, i32) {
    %c0_i32 = arith.constant 0 : i32
    %c0_i32_0 = arith.constant 0 : i32
    return %arg0, %c0_i32 : i32, i32
  }
  func.func @transform_3(%arg0: i32) -> (i32, i32) {
    %c0_i32 = arith.constant 0 : i32
    %c0_i32_0 = arith.constant 0 : i32
    return %arg0, %c0_i32 : i32, i32
  }
}

</mosaic_0001>

<bundles_post_ra>
// kernel: tpu_custom_call.1
= control target key start
LH: loop header
LB: loop body
LE: loop exit
PB: predicated region body
PF: predicated region fallthrough
CT: control target
= control target key end

     0   :  { %v337_v2 = vmov 0   ;;  %v338_v9 = vmov 0.0|0.0   ;;  %vm339_vm0 = vmmov 0   ;;  %v340_v11 = vmov 0.0   ;;  %s470_s0 = inlined_call_operand.vmem [shape: s32[40,1], index: 0, kind: input, shape index: {}]   ;;  %s471_s1 = inlined_call_operand.vmem [shape: f32[128,64], index: 1, kind: input, shape index: {}]   ;;  %s472_s2 = inlined_call_operand.vmem [shape: f32[40,64], index: 2, kind: input, shape index: {}]   ;;  %s473_s3 = inlined_call_operand.hbm [shape: f32[40,64], index: 3, kind: output, shape index: {}]  }
   0x1   :  { %v18_v0 = vld [vmem:[%s470_s0 + $0x18] sm:$0xff]  ;;  %v15_v1 = vld [vmem:[%s470_s0] sm:$0xff]  ;;  %312 = vset.pattern.permute.xlu1 %v337_v2  ;;  %311 = vset.pattern.permute.xlu0 %v337_v2  ;;  %v53_v4 = vld [vmem:[%s471_s1 + $0x8] sm:$0xff] }
   0x2   :  { %v52_v3 = vld [vmem:[%s471_s1] sm:$0xff]  ;;  %32 = vperm.xlu1 %312, %v18_v0   ;;  %23 = vperm.xlu0 %311, %v15_v1   ;;  %v54_v5 = vld [vmem:[%s471_s1 + $0x10] sm:$0xff]  ;;  %v55_v6 = vld [vmem:[%s471_s1 + $0x18] sm:$0xff] }
   0x3   :  { %v17_v7 = vld [vmem:[%s470_s0 + $0x10] sm:$0xff]  ;;  %v16_v8 = vld [vmem:[%s470_s0 + $0x8] sm:$0xff]  ;;  %263 = vmatprep.subr.bf16.mxu0 %v338_v9  ;;  %v264_v10 = vpack.c.bf16 %v53_v4, %v52_v3  ;;  %287 = vmatprep.subr.bf16.mxu1 %v338_v9  ;;  %v267_v12 = vpack.c.bf16 %v55_v6, %v54_v5  ;;  %v56_v13 = vld [vmem:[%s471_s1 + $0x20] sm:$0xff] }
   0x4   :  { %248 = vmatprep.mubr.msk.f32.mxu0 %vm339_vm0, %v340_v11  ;;  %257 = vmatprep.mubr.msk.f32.mxu1 %vm339_vm0, %v340_v11  ;;  %v57_v14 = vld [vmem:[%s471_s1 + $0x28] sm:$0xff]  ;;  %v19_v15 = vld [vmem:[%s470_s0 + $0x20] sm:$0xff] }
   0x5   :  { %265 = vmatpush3.bf16.msra.mxu0 %v264_v10  ;;  %295 = vmatpush3.bf16.msra.mxu1 %v264_v10 }
   0x6   :  { %29 = vperm.xlu1 %312, %v17_v7   ;;  %26 = vperm.xlu0 %311, %v16_v8  }
   0x7   :  { %266 = vmatprep.subr.bf16.mxu0 %v338_v9  ;;  %288 = vmatprep.subr.bf16.mxu1 %v338_v9 }
   0x8   :  { %8 = vsyncpa [#allocation3], 0  ;;  %v270_v16 = vpack.c.bf16 %v57_v14, %v56_v13  ;;  %v58_v17 = vld [vmem:[%s471_s1 + $0x30] sm:$0xff]  ;;  %v59_v18 = vld [vmem:[%s471_s1 + $0x38] sm:$0xff]  ;;  %v20_v32 = vlaneseq  ;;  %v341_v36 = vmov 1.0   ;;  %vm163_vm6 = vcmask 523264  }
   0x9   :  { %268 = vmatpush3.bf16.msra.mxu0 %v267_v12  ;;  %296 = vmatpush3.bf16.msra.mxu1 %v267_v12  ;;  %v273_v19 = vpack.c.bf16 %v59_v18, %v58_v17  ;;  %v60_v20 = vld [vmem:[%s471_s1 + $0x40] sm:$0xff]  ;;  %v61_v21 = vld [vmem:[%s471_s1 + $0x48] sm:$0xff]  ;;  %v62_v23 = vld [vmem:[%s471_s1 + $0x50] sm:$0xff]  ;;  %s342_s4 = smov [#allocation2]  }
   0xa   :  { %35 = vperm.xlu0 %311, %v19_v15   ;;  %269 = vmatprep.subr.bf16.mxu0 %v338_v9  ;;  %v276_v22 = vpack.c.bf16 %v61_v21, %v60_v20  ;;  %v63_v24 = vld [vmem:[%s471_s1 + $0x58] sm:$0xff]  ;;  %v64_v26 = vld [vmem:[%s471_s1 + $0x60] sm:$0xff]  ;;  %v65_v27 = vld [vmem:[%s471_s1 + $0x68] sm:$0xff]  ;;  %v21_v33 = vand.u32 127, %v20_v32  ;;  %s174_s5 = sshll.u32 %s342_s4, 4  ;;  %s175_s5 = int_to_ptr.vmem [resolvable:$true] %s174_s5 }
   0xb   :  { %289 = vmatprep.subr.bf16.mxu1 %v338_v9  ;;  %v279_v25 = vpack.c.bf16 %v63_v24, %v62_v23  ;;  %v282_v28 = vpack.c.bf16 %v65_v27, %v64_v26  ;;  %v66_v29 = vld [vmem:[%s471_s1 + $0x70] sm:$0xff]  ;;  %v67_v30 = vld [vmem:[%s471_s1 + $0x78] sm:$0xff]  ;;  %v68_v40 = vld [vmem:[%s472_s2] sm:$0xff]  ;;  %s313_s10 = scalar_lea.vmem %s175_s5, 640  ;;  %p318_p1 = scmp.lt.s32.totalorder %s175_s5, %s175_s5 }
   0xc   :  { %v285_v31 = vpack.c.bf16 %v67_v30, %v66_v29  ;;  %v71_v41 = vld [vmem:[%s472_s2 + $0x18] sm:$0xff]  ;;  %v69_v48 = vld [vmem:[%s472_s2 + $0x8] sm:$0xff]  ;;  %v70_v52 = vld [vmem:[%s472_s2 + $0x10] sm:$0xff]  ;;  %p314_p0 = scmp.ne.s32.totalorder %s175_s5, %s313_s10  ;;  %p319_p2 = scmp.lt.s32.totalorder %s313_s10, %s313_s10 }
   0xd   :  { %271 = vmatpush3.bf16.msra.mxu0 %v270_v16  ;;  %297 = vmatpush3.bf16.msra.mxu1 %v270_v16  ;;  %v72_v53 = vld [vmem:[%s472_s2 + $0x20] sm:$0xff] }
   0xe   :  { %272 = vmatprep.subr.bf16.mxu0 %v338_v9  ;;  %290 = vmatprep.subr.bf16.mxu1 %v338_v9  ;;  %p320_p3 = por %p319_p2, %p318_p1 }
  0x10   :  { %p321_p4 = pnand %p320_p3, %p314_p0 }
  0x11   :  { %274 = vmatpush3.bf16.msra.mxu0 %v273_v19  ;;  %298 = vmatpush3.bf16.msra.mxu1 %v273_v19 }
  0x12   :  { %275 = vmatprep.subr.bf16.mxu0 %v338_v9  ;;  %291 = vmatprep.subr.bf16.mxu1 %v338_v9 }
  0x15   :  { %277 = vmatpush3.bf16.msra.mxu0 %v276_v22  ;;  %299 = vmatpush3.bf16.msra.mxu1 %v276_v22 }
  0x16   :  { %278 = vmatprep.subr.bf16.mxu0 %v338_v9  ;;  %292 = vmatprep.subr.bf16.mxu1 %v338_v9 }
  0x19   :  { %280 = vmatpush3.bf16.msra.mxu0 %v279_v25  ;;  %300 = vmatpush3.bf16.msra.mxu1 %v279_v25 }
  0x1a   :  { %281 = vmatprep.subr.bf16.mxu0 %v338_v9  ;;  %293 = vmatprep.subr.bf16.mxu1 %v338_v9 }
  0x1d   :  { %283 = vmatpush3.bf16.msra.mxu0 %v282_v28  ;;  %301 = vmatpush3.bf16.msra.mxu1 %v282_v28 }
  0x1e   :  { %284 = vmatprep.subr.bf16.mxu0 %v338_v9  ;;  %294 = vmatprep.subr.bf16.mxu1 %v338_v9 }
  0x21   :  { %286 = vmatpush3.bf16.msra.mxu0 %v285_v31  ;;  %302 = vmatpush3.bf16.msra.mxu1 %v285_v31 }
  0x81   :  { %v33_v34 = vpop.permute.xlu1 %32  ;;  %v24_v35 = vpop.permute.xlu0 %23 }
  0x82   :  { %vm40_vm1 = vcmp.eq.s32.totalorder %v21_v33, %v33_v34  ;;  %vm37_vm2 = vcmp.eq.s32.totalorder %v21_v33, %v24_v35 }
  0x83   :  { %249 = vmatmul.mubr.msk.f32.vlgmr.msra.gmra.mrb[0].mxu0 %vm37_vm2, %v341_v36  ;;  %258 = vmatmul.mubr.msk.f32.vlgmr.msra.gmra.mrb[0].mxu1 %vm40_vm1, %v341_v36 }
  0x84   :  { %251 = vmatprep.mubr.msk.f32.mxu0 %vm339_vm0, %v340_v11  ;;  %260 = vmatprep.mubr.msk.f32.mxu1 %vm339_vm0, %v340_v11 }
  0x85   :  { %v27_v37 = vpop.permute.xlu0 %26  ;;  %v30_v38 = vpop.permute.xlu1 %29 }
  0x86   :  { %vm38_vm3 = vcmp.eq.s32.totalorder %v21_v33, %v27_v37  ;;  %vm39_vm4 = vcmp.eq.s32.totalorder %v21_v33, %v30_v38 }
  0x87   :  { %252 = vmatmul.mubr.msk.f32.gmra.mrb[2].mxu0 %vm38_vm3, %v341_v36 }
  0x88   :  { %254 = vmatprep.mubr.msk.f32.mxu0 %vm339_vm0, %v340_v11 }
  0x89   :  { %v36_v39 = vpop.permute.xlu0 %35 }
  0x8a   :  { %vm41_vm5 = vcmp.eq.s32.totalorder %v21_v33, %v36_v39 }
  0x8b   :  { %255 = vmatmul.mubr.msk.f32.gmra.mrb[4].mxu0 %vm39_vm4, %v341_v36  ;;  %261 = vmatmul.mubr.msk.f32.gmra.mrb[2].mxu1 %vm41_vm5, %v341_v36 }
 0x156   :  { %v139_v42 = vpop.f32.mrb[0].mxu0  ;;  %v154_v43 = vpop.f32.mrb[0].mxu1 }
 0x157   :  { %v140_v44 = vadd.f32 %v139_v42, %v68_v40  ;;  %v250_v45 = vpop.f32.mrb[1].mxu0  ;;  %v155_v46 = vadd.f32 %v154_v43, %v71_v41  ;;  %v259_v47 = vpop.f32.mrb[1].mxu1 }
 0x159   :  { %164 = vst.msk [vmem:[#allocation2] sm:$0xff] %vm163_vm6, %v140_v44  ;;  %167 = vst.msk [vmem:[#allocation2 + $0x18] sm:$0xff] %vm163_vm6, %v155_v46 }
 0x15a   :  { %v144_v49 = vpop.f32.mrb[2].mxu0 }
 0x15b   :  { %v145_v50 = vadd.f32 %v144_v49, %v69_v48  ;;  %v253_v51 = vpop.f32.mrb[3].mxu0 }
 0x15d   :  { %165 = vst.msk [vmem:[#allocation2 + $0x8] sm:$0xff] %vm163_vm6, %v145_v50 }
 0x15e   :  { %v149_v54 = vpop.f32.mrb[4].mxu0  ;;  %v159_v55 = vpop.f32.mrb[2].mxu1 }
 0x15f   :  { %v150_v56 = vadd.f32 %v149_v54, %v70_v52  ;;  %v160_v57 = vadd.f32 %v159_v55, %v72_v53  ;;  %v256_v58 = vpop.f32.mrb[5].mxu0  ;;  %v262_v59 = vpop.f32.mrb[3].mxu1 }
 0x161   :  { %166 = vst.msk [vmem:[#allocation2 + $0x10] sm:$0xff] %vm163_vm6, %v150_v56  ;;  %168 = vst.msk [vmem:[#allocation2 + $0x20] sm:$0xff] %vm163_vm6, %v160_v57 }
 0x162   :  { %324 = shalt.err (!%p321_p4)
}
 0x163   :  { %s325_s11 = scalar_lea.hbm %s473_s3, 640 }
 0x164   :  { %p326_p5 = scmp.ne.s32.totalorder %s473_s3, %s325_s11  ;;  %p329_p6 = scmp.lt.u32.totalorder %s325_s11, %s473_s3 }
 0x166   :  { %p331_p7 = pnand %p329_p6, %p326_p5 }
 0x168   :  { %334 = shalt.err (!%p331_p7)
}
 0x169   :  { %s343_s16 = smov 128   ;;  %s344_s17 = smov 8  }
 0x16a   :  { %180 = dma.vmem_to_hbm [thread:$0]  %s175_s5, 640, %s473_s3, [#allocation3], %s343_s16, %s343_s16, %s344_s17  }
 0x16b   :  { %335 = dma.done.wait [#allocation3], 640  }
 0x16c   :  { %336 = vsyncadd [#allocation3], 4294966656 }
 0x16d   :  { %184 = vsyncpa [#allocation3], 1 }

</bundles_post_ra>
